<compile_context>
chip_gen: v7x
topology: tpu7x:2x2x1
jax: 0.10.0
libtpu: 0.0.40
codegen_flags: <defaults>
</compile_context>

<pallas_src>
import functools

import jax
import jax.numpy as jnp
from jax.experimental import pallas as pl
from jax.experimental.pallas import tpu as pltpu


def _round_up(x, m):
    return ((x + m - 1) // m) * m


def _cdiv(a, b):
    return (a + b - 1) // b


def _is_multicore_tpu():
    """Best-effort detection of a multi-TensorCore chip (v7x). Falls back to False."""
    try:
        kind = jax.devices()[0].device_kind.lower()
        return "v7" in kind or "7x" in kind
    except Exception:
        return False


def _default_block_b(B, multi_core):
    """Balanced batch tile: multiple of 16 rows (bf16 sublane packing), cap ~512 rows,
    and at least 2 tiles on multi-core chips when there is enough work."""
    if B <= 16:
        return 16
    min_tiles = 2 if (multi_core and B >= 64) else 1
    n_tiles = max(min_tiles, _cdiv(B, 512))
    return _round_up(_cdiv(B, n_tiles), 16)


def _qnet_kernel(x_ref, w1_ref, b1_ref, w2_ref, b2_ref, w3_ref, b3_ref, o_ref):
    # Fully fused forward: (Linear + ReLU) x 2 + final Linear.
    # x and all weights arrive as bf16; accumulation / bias-add / ReLU are f32.
    bf16 = jnp.bfloat16
    h1 = jnp.dot(x_ref[...], w1_ref[...],
                 preferred_element_type=jnp.float32) + b1_ref[...]
    h1 = jnp.maximum(h1, 0.0)
    h2 = jnp.dot(h1.astype(bf16), w2_ref[...],
                 preferred_element_type=jnp.float32) + b2_ref[...]
    h2 = jnp.maximum(h2, 0.0)
    out = jnp.dot(h2.astype(bf16), w3_ref[...],
                  preferred_element_type=jnp.float32) + b3_ref[...]
    o_ref[...] = out.astype(o_ref.dtype)


def prepare_params(params):
    """One-time weight prep (call once, reuse every forward):
      * weights cast to bf16 (MXU operand dtype),
      * final layer zero-padded to a multiple of 128 output lanes (lane-dense store),
      * biases kept f32 with shape (1, out) for sublane broadcast.
    """
    bf16 = jnp.bfloat16
    w3, b3 = params["w3"], params["b3"]
    A = w3.shape[1]
    A_pad = _round_up(max(A, 128), 128)
    if A_pad != A:
        w3 = jnp.pad(w3, ((0, 0), (0, A_pad - A)))
        b3 = jnp.pad(b3, ((0, 0), (0, A_pad - A)))
    return {
        "w1": params["w1"].astype(bf16), "b1": params["b1"].astype(jnp.float32),
        "w2": params["w2"].astype(bf16), "b2": params["b2"].astype(jnp.float32),
        "w3": w3.astype(bf16), "b3": b3.astype(jnp.float32),
    }


@functools.partial(jax.jit, static_argnames=("action_size", "block_b", "multi_core"))
def qnetwork_forward(state, prepared, *, action_size, block_b=None, multi_core=False):
    """QNetwork forward pass with a fused Pallas TPU kernel.

    state:     (B, state_size) float32 (cast to bf16 here for the MXU)
    prepared:  output of prepare_params (bf16 weights, 128-padded final layer)
    action_size: original (unpadded) action dimension, used for the final slice
    block_b:   optional batch-tile override (rounded up to a multiple of 16)
    multi_core: True on 2-TC chips (v7x) -> guarantees >=2 parallel batch tiles
    """
    w1, b1 = prepared["w1"], prepared["b1"]
    w2, b2 = prepared["w2"], prepared["b2"]
    w3, b3 = prepared["w3"], prepared["b3"]

    B, S = state.shape
    H = w1.shape[1]
    A_pad = w3.shape[1]

    if block_b is None:
        block_b = _default_block_b(B, multi_core)
    block_b = max(16, _round_up(block_b, 16))
    block_b = min(block_b, _round_up(B, 16))
    B_pad = _round_up(B, block_b)

    # bf16 state (halves the x DMA; MXU needs bf16 anyway).
    x = state.astype(w1.dtype)
    if B_pad != B:
        x = jnp.pad(x, ((0, B_pad - B), (0, 0)))

    grid = (B_pad // block_b,)

    # Weights/biases use the same block index every grid step -> stay resident in VMEM.
    rep2d = lambda shape: pl.BlockSpec(shape, lambda i: (0, 0))

    flops = 2 * B_pad * (S * H + H * H + H * A_pad)
    bytes_accessed = (
        B_pad * S * 2                                   # bf16 state in
        + (S * H + H * H + H * A_pad) * 2               # bf16 weights
        + (2 * H + A_pad) * 4                           # f32 biases
        + B_pad * A_pad * 4                             # f32 output
    )

    out = pl.pallas_call(
        _qnet_kernel,
        out_shape=jax.ShapeDtypeStruct((B_pad, A_pad), jnp.float32),
        grid_spec=pltpu.PrefetchScalarGridSpec(
            num_scalar_prefetch=0,
            grid=grid,
            in_specs=[
                pl.BlockSpec((block_b, S), lambda i: (i, 0)),  # state tile
                rep2d((S, H)),
                rep2d((1, H)),
                rep2d((H, H)),
                rep2d((1, H)),
                rep2d((H, A_pad)),
                rep2d((1, A_pad)),
            ],
            out_specs=pl.BlockSpec((block_b, A_pad), lambda i: (i, 0)),
        ),
        compiler_params=pltpu.CompilerParams(
            # Batch tiles are independent -> shard across TCs on v7x.
            dimension_semantics=("parallel",),
        ),
        cost_estimate=pl.CostEstimate(
            flops=flops, transcendentals=0, bytes_accessed=bytes_accessed),
    )(x, w1, b1, w2, b2, w3, b3)

    return out[:B, :action_size]


def init_qnetwork_params(key, state_size, action_size, hidden=512):
    """Deterministic init mimicking PyTorch nn.Linear default
    (U[-1/sqrt(fan_in), 1/sqrt(fan_in)]). Weights stored as (in_features, out_features)."""
    def linear(k, fan_in, fan_out):
        kw, kb = jax.random.split(k)
        bound = 1.0 / jnp.sqrt(jnp.float32(fan_in))
        w = jax.random.uniform(kw, (fan_in, fan_out), jnp.float32, -bound, bound)
        b = jax.random.uniform(kb, (1, fan_out), jnp.float32, -bound, bound)
        return w, b

    k1, k2, k3 = jax.random.split(key, 3)
    w1, b1 = linear(k1, state_size, hidden)
    w2, b2 = linear(k2, hidden, hidden)
    w3, b3 = linear(k3, hidden, action_size)
    return {"w1": w1, "b1": b1, "w2": w2, "b2": b2, "w3": w3, "b3": b3}


def _reference_forward(state, p):
    # Matches the kernel's numerics: bf16 MXU operands, f32 accumulation,
    # f32 bias-add / ReLU.
    bf16, f32 = jnp.bfloat16, jnp.float32
    h1 = jnp.maximum(
        jnp.dot(state.astype(bf16), p["w1"].astype(bf16),
                preferred_element_type=f32) + p["b1"], 0.0)
    h2 = jnp.maximum(
        jnp.dot(h1.astype(bf16), p["w2"].astype(bf16),
                preferred_element_type=f32) + p["b2"], 0.0)
    return jnp.dot(h2.astype(bf16), p["w3"].astype(bf16),
                   preferred_element_type=f32) + p["b3"]


if __name__ == "__main__":
    key = jax.random.PRNGKey(0)
    k_params, k_state = jax.random.split(key)

    # Small shapes consistent with a DQN state/action interface.
    batch, state_size, action_size = 8, 16, 4

    params = init_qnetwork_params(k_params, state_size, action_size)
    prepared = prepare_params(params)          # one-time bf16 cast + lane padding
    multi_core = _is_multicore_tpu()

    state = jax.random.normal(k_state, (batch, state_size), dtype=jnp.float32)
    out = jax.block_until_ready(
        qnetwork_forward(state, prepared, action_size=action_size,
                         multi_core=multi_core))
    ref = _reference_forward(state, params)
    assert out.shape == (batch, action_size)
    assert jnp.allclose(out, ref, atol=5e-3, rtol=5e-3), "mismatch vs JAX reference"

    # Non-divisible batch + multi-tile grid path (tail padding + grid > 1).
    state_odd = jax.random.normal(jax.random.PRNGKey(1), (40, state_size),
                                  dtype=jnp.float32)
    out_odd = jax.block_until_ready(
        qnetwork_forward(state_odd, prepared, action_size=action_size,
                         block_b=16, multi_core=multi_core))
    ref_odd = _reference_forward(state_odd, params)
    assert out_odd.shape == (40, action_size)
    assert jnp.allclose(out_odd, ref_odd, atol=5e-3, rtol=5e-3), "mismatch on padded batch"

    print("KERNEL_OK")
</pallas_src>

<mosaic_0001>
module attributes {stable_mosaic.version = 11 : i64} {
  func.func @_qnet_kernel(%arg0: i32, %arg1: memref<16x16xbf16, #tpu.memory_space<vmem>>, %arg2: memref<16x512xbf16, #tpu.memory_space<vmem>>, %arg3: memref<1x512xf32, #tpu.memory_space<vmem>>, %arg4: memref<512x512xbf16, #tpu.memory_space<vmem>>, %arg5: memref<1x512xf32, #tpu.memory_space<vmem>>, %arg6: memref<512x128xbf16, #tpu.memory_space<vmem>>, %arg7: memref<1x128xf32, #tpu.memory_space<vmem>>, %arg8: memref<16x128xf32, #tpu.memory_space<vmem>>) attributes {dimension_semantics = [#tpu.dimension_semantics<parallel>], iteration_bounds = array<i64: 1>, scalar_prefetch = 0 : i64, scratch_operands = 0 : i64, tpu.core_type = #tpu.core_type<tc>, window_params = [{transform_indices = @transform_0, window_bounds = array<i64: 16, 16>}, {pipeline_mode = #tpu.pipeline_mode<synchronous>, transform_indices = @transform_1, window_bounds = array<i64: 16, 512>}, {pipeline_mode = #tpu.pipeline_mode<synchronous>, transform_indices = @transform_2, window_bounds = array<i64: 1, 512>}, {pipeline_mode = #tpu.pipeline_mode<synchronous>, transform_indices = @transform_3, window_bounds = array<i64: 512, 512>}, {pipeline_mode = #tpu.pipeline_mode<synchronous>, transform_indices = @transform_4, window_bounds = array<i64: 1, 512>}, {pipeline_mode = #tpu.pipeline_mode<synchronous>, transform_indices = @transform_5, window_bounds = array<i64: 512, 128>}, {pipeline_mode = #tpu.pipeline_mode<synchronous>, transform_indices = @transform_6, window_bounds = array<i64: 1, 128>}, {transform_indices = @transform_7, window_bounds = array<i64: 16, 128>}]} {
    %c0 = arith.constant 0 : index
    %c0_0 = arith.constant 0 : index
    %0 = vector.load %arg1[%c0, %c0_0] : memref<16x16xbf16, #tpu.memory_space<vmem>>, vector<16x16xbf16>
    %c0_1 = arith.constant 0 : index
    %c0_2 = arith.constant 0 : index
    %1 = vector.load %arg2[%c0_1, %c0_2] : memref<16x512xbf16, #tpu.memory_space<vmem>>, vector<16x512xbf16>
    %cst = arith.constant dense<0.000000e+00> : vector<16x512xf32>
    %2 = tpu.matmul %0, %1, %cst {dimension_numbers = #tpu.dot_dimension_numbers<[1], [0], [0], [1], [0, 0, 1, 1], [], []>} : vector<16x16xbf16>, vector<16x512xbf16>, vector<16x512xf32> -> vector<16x512xf32>
    %c0_3 = arith.constant 0 : index
    %c0_4 = arith.constant 0 : index
    %3 = vector.load %arg3[%c0_3, %c0_4] : memref<1x512xf32, #tpu.memory_space<vmem>>, vector<1x512xf32>
    %4 = vector.broadcast %3 : vector<1x512xf32> to vector<16x512xf32>
    %5 = arith.addf %2, %4 : vector<16x512xf32>
    %cst_5 = arith.constant 0.000000e+00 : f32
    %6 = vector.broadcast %cst_5 : f32 to vector<16x512xf32>
    %7 = arith.maximumf %5, %6 : vector<16x512xf32>
    %8 = arith.truncf %7 : vector<16x512xf32> to vector<16x512xbf16>
    %c0_6 = arith.constant 0 : index
    %c0_7 = arith.constant 0 : index
    %9 = vector.load %arg4[%c0_6, %c0_7] : memref<512x512xbf16, #tpu.memory_space<vmem>>, vector<512x512xbf16>
    %cst_8 = arith.constant dense<0.000000e+00> : vector<16x512xf32>
    %10 = tpu.matmul %8, %9, %cst_8 {dimension_numbers = #tpu.dot_dimension_numbers<[1], [0], [0], [1], [0, 0, 1, 1], [], []>} : vector<16x512xbf16>, vector<512x512xbf16>, vector<16x512xf32> -> vector<16x512xf32>
    %c0_9 = arith.constant 0 : index
    %c0_10 = arith.constant 0 : index
    %11 = vector.load %arg5[%c0_9, %c0_10] : memref<1x512xf32, #tpu.memory_space<vmem>>, vector<1x512xf32>
    %12 = vector.broadcast %11 : vector<1x512xf32> to vector<16x512xf32>
    %13 = arith.addf %10, %12 : vector<16x512xf32>
    %cst_11 = arith.constant 0.000000e+00 : f32
    %14 = vector.broadcast %cst_11 : f32 to vector<16x512xf32>
    %15 = arith.maximumf %13, %14 : vector<16x512xf32>
    %16 = arith.truncf %15 : vector<16x512xf32> to vector<16x512xbf16>
    %c0_12 = arith.constant 0 : index
    %c0_13 = arith.constant 0 : index
    %17 = vector.load %arg6[%c0_12, %c0_13] : memref<512x128xbf16, #tpu.memory_space<vmem>>, vector<512x128xbf16>
    %cst_14 = arith.constant dense<0.000000e+00> : vector<16x128xf32>
    %18 = tpu.matmul %16, %17, %cst_14 {dimension_numbers = #tpu.dot_dimension_numbers<[1], [0], [0], [1], [0, 0, 1, 1], [], []>} : vector<16x512xbf16>, vector<512x128xbf16>, vector<16x128xf32> -> vector<16x128xf32>
    %c0_15 = arith.constant 0 : index
    %c0_16 = arith.constant 0 : index
    %19 = vector.load %arg7[%c0_15, %c0_16] : memref<1x128xf32, #tpu.memory_space<vmem>>, vector<1x128xf32>
    %20 = vector.broadcast %19 : vector<1x128xf32> to vector<16x128xf32>
    %21 = arith.addf %18, %20 : vector<16x128xf32>
    %c0_17 = arith.constant 0 : index
    %c0_18 = arith.constant 0 : index
    %22 = vector.load %arg8[%c0_17, %c0_18] : memref<16x128xf32, #tpu.memory_space<vmem>>, vector<16x128xf32>
    tpu.vector_store %arg8[%c0_17, %c0_18], %21 {strides = array<i32>} : memref<16x128xf32, #tpu.memory_space<vmem>>, vector<16x128xf32>,
    return
  }
  func.func @transform_0(%arg0: i32) -> (i32, i32) {
    %c0_i32 = arith.constant 0 : i32
    %c0_i32_0 = arith.constant 0 : i32
    return %arg0, %c0_i32 : i32, i32
  }
  func.func @transform_1(%arg0: i32) -> (i32, i32) {
    %c0_i32 = arith.constant 0 : i32
    %c0_i32_0 = arith.constant 0 : i32
    %c0_i32_1 = arith.constant 0 : i32
    return %c0_i32, %c0_i32_0 : i32, i32
  }
  func.func @transform_2(%arg0: i32) -> (i32, i32) {
    %c0_i32 = arith.constant 0 : i32
    %c0_i32_0 = arith.constant 0 : i32
    %c0_i32_1 = arith.constant 0 : i32
    return %c0_i32, %c0_i32_0 : i32, i32
  }
  func.func @transform_3(%arg0: i32) -> (i32, i32) {
    %c0_i32 = arith.constant 0 : i32
    %c0_i32_0 = arith.constant 0 : i32
    %c0_i32_1 = arith.constant 0 : i32
    return %c0_i32, %c0_i32_0 : i32, i32
  }
  func.func @transform_4(%arg0: i32) -> (i32, i32) {
    %c0_i32 = arith.constant 0 : i32
    %c0_i32_0 = arith.constant 0 : i32
    %c0_i32_1 = arith.constant 0 : i32
    return %c0_i32, %c0_i32_0 : i32, i32
  }
  func.func @transform_5(%arg0: i32) -> (i32, i32) {
    %c0_i32 = arith.constant 0 : i32
    %c0_i32_0 = arith.constant 0 : i32
    %c0_i32_1 = arith.constant 0 : i32
    return %c0_i32, %c0_i32_0 : i32, i32
  }
  func.func @transform_6(%arg0: i32) -> (i32, i32) {
    %c0_i32 = arith.constant 0 : i32
    %c0_i32_0 = arith.constant 0 : i32
    %c0_i32_1 = arith.constant 0 : i32
    return %c0_i32, %c0_i32_0 : i32, i32
  }
  func.func @transform_7(%arg0: i32) -> (i32, i32) {
    %c0_i32 = arith.constant 0 : i32
    %c0_i32_0 = arith.constant 0 : i32
    return %arg0, %c0_i32 : i32, i32
  }
}

</mosaic_0001>

<bundles_post_ra>
// kernel: qnetwork_forward.1
= control target key start
LH: loop header
LB: loop body
LE: loop exit
PB: predicated region body
PF: predicated region fallthrough
CT: control target
= control target key end

     0   :  { %12 = vsyncpa [#allocation3], 0  ;;  %s2224_s0 = inlined_call_operand.vmem [shape: bf16[16,16], index: 0, kind: input, shape index: {}]   ;;  %s2225_s1 = inlined_call_operand.vmem [shape: bf16[16,512], index: 1, kind: input, shape index: {}]   ;;  %s2226_s2 = inlined_call_operand.vmem [shape: f32[1,512], index: 2, kind: input, shape index: {}]   ;;  %s2227_s3 = inlined_call_operand.hbm [shape: bf16[512,512], index: 3, kind: input, shape index: {}]   ;;  %s2228_s4 = inlined_call_operand.vmem [shape: f32[1,512], index: 4, kind: input, shape index: {}]   ;;  %s2229_s5 = inlined_call_operand.hbm [shape: bf16[512,128], index: 5, kind: input, shape index: {}]   ;;  %s2230_s6 = inlined_call_operand.hbm [shape: f32[1,128], index: 6, kind: input, shape index: {}]   ;;  %s2231_s7 = inlined_call_operand.vmem [shape: f32[16,128], index: 7, kind: output, shape index: {}]  }
   0x1   :  { %13 = vsyncpa [#allocation5], 0  ;;  %s2085_s24 = smov [#allocation4]   ;;  %s2015_s28 = scalar_lea.hbm %s2229_s5, 4096 }
   0x2   :  { %s39_s25 = sshll.u32 %s2085_s24, 4  ;;  %p2016_p0 = scmp.ne.s32.totalorder %s2229_s5, %s2015_s28  ;;  %s40_s25 = int_to_ptr.vmem [resolvable:$true] %s39_s25 }
   0x3   :  { %p2019_p1 = scmp.lt.u32.totalorder %s2015_s28, %s2229_s5 }
   0x5   :  { %p2021_p2 = pnand %p2019_p1, %p2016_p0 }
   0x7   :  { %2024 = shalt.err (!%p2021_p2)
}
   0x8   :  { %s2025_s10 = scalar_lea.vmem %s40_s25, 4096  ;;  %p2030_p4 = scmp.lt.s32.totalorder %s40_s25, %s40_s25 }
   0x9   :  { %p2026_p3 = scmp.ne.s32.totalorder %s40_s25, %s2025_s10  ;;  %p2031_p5 = scmp.lt.s32.totalorder %s2025_s10, %s2025_s10 }
   0xb   :  { %p2032_p6 = por %p2031_p5, %p2030_p4 }
   0xd   :  { %p2033_p7 = pnand %p2032_p6, %p2026_p3 }
   0xf   :  { %2036 = shalt.err (!%p2033_p7)
}
  0x10   :  { %s2086_s11 = smov 64   ;;  %s2087_s12 = smov 4  }
  0x11   :  { %45 = dma.hbm_to_vmem [thread:$0]  %s2229_s5, 4096, %s40_s25, [#allocation5], %s2086_s11, %s2086_s11, %s2087_s12  }
  0x12   :  { %s2088_s15 = smov [#allocation2]   ;;  %s2037_s19 = scalar_lea.hbm %s2227_s3, 16384 }
  0x13   :  { %s25_s16 = sshll.u32 %s2088_s15, 4  ;;  %p2038_p8 = scmp.ne.s32.totalorder %s2227_s3, %s2037_s19  ;;  %s26_s16 = int_to_ptr.vmem [resolvable:$true] %s25_s16 }
  0x14   :  { %p2041_p9 = scmp.lt.u32.totalorder %s2037_s19, %s2227_s3 }
  0x16   :  { %p2043_p10 = pnand %p2041_p9, %p2038_p8 }
  0x18   :  { %2046 = shalt.err (!%p2043_p10)
}
  0x19   :  { %s2047_s24 = scalar_lea.vmem %s26_s16, 16384  ;;  %p2052_p12 = scmp.lt.s32.totalorder %s26_s16, %s26_s16 }
  0x1a   :  { %p2048_p11 = scmp.ne.s32.totalorder %s26_s16, %s2047_s24  ;;  %p2053_p13 = scmp.lt.s32.totalorder %s2047_s24, %s2047_s24 }
  0x1c   :  { %p2054_p0 = por %p2053_p13, %p2052_p12 }
  0x1e   :  { %p2055_p1 = pnand %p2054_p0, %p2048_p11 }
  0x20   :  { %2058 = shalt.err (!%p2055_p1)
}
  0x21   :  { %s2089_s5 = smov 256   ;;  %s2090_s25 = smov 16  }
  0x22   :  { %31 = dma.hbm_to_vmem [thread:$0]  %s2227_s3, 16384, %s26_s16, [#allocation3], %s2089_s5, %s2089_s5, %s2090_s25  }
  0x23   :  { %s2091_s28 = smov [#allocation6]   ;;  %s2059_s9 = scalar_lea.hbm %s2230_s6, 16 }
  0x24   :  { %s52_s29 = sshll.u32 %s2091_s28, 4  ;;  %p2060_p2 = scmp.ne.s32.totalorder %s2230_s6, %s2059_s9  ;;  %s53_s29 = int_to_ptr.vmem [resolvable:$true] %s52_s29 }
  0x25   :  { %p2063_p3 = scmp.lt.u32.totalorder %s2059_s9, %s2230_s6 }
  0x27   :  { %p2065_p4 = pnand %p2063_p3, %p2060_p2 }
  0x29   :  { %2068 = shalt.err (!%p2065_p4)
}
  0x2a   :  { %s2069_s14 = scalar_lea.vmem %s53_s29, 16  ;;  %s2073_s3 = scalar_lea.vmem %s53_s29, 32 }
  0x2b   :  { %p2070_p5 = scmp.ne.s32.totalorder %s53_s29, %s2069_s14  ;;  %p2074_p6 = scmp.lt.s32.totalorder %s53_s29, %s53_s29 }
  0x2c   :  { %p2075_p7 = scmp.lt.s32.totalorder %s2073_s3, %s2069_s14 }
  0x2e   :  { %p2076_p8 = por %p2075_p7, %p2074_p6 }
  0x30   :  { %p2077_p9 = pnand %p2076_p8, %p2070_p5 }
  0x32   :  { %2080 = shalt.err (!%p2077_p9)
}
  0x33   :  { %55 = dma.hbm_to_vmem [thread:$0]  %s2230_s6, 16, %s53_s29, [#allocation5]  }
  0x34   :  { %2081 = dma.done.wait [#allocation3], 16384  }
  0x35   :  { %2082 = vsyncadd [#allocation3], 4294950912 }
  0x36   :  { %2083 = dma.done.wait [#allocation5], 4112  }
  0x37   :  { %2084 = vsyncadd [#allocation5], 4294963184  ;;  %v2092_v0 = vmov 0   ;;  %v1784_v1 = vld [vmem:[%s2225_s1 + $0x4] ss:$16 sps:$4 sm:$0xff]   ;;  %vm119_vm0 = vcmask 130048  }
  0x38   :  { %155 = vmatprep.mubr.bf16.mxu0 %v2092_v0  ;;  %198 = vmatprep.mubr.bf16.mxu1 %v2092_v0  ;;  %v1786_v2 = vld [vmem:[%s2225_s1] ss:$16 sps:$4 sm:$0xff]   ;;  %v1788_v4 = vld [vmem:[%s2225_s1 + $0xc] ss:$16 sps:$4 sm:$0xff]   ;;  %v1790_v5 = vld [vmem:[%s2225_s1 + $0x8] ss:$16 sps:$4 sm:$0xff]  }
  0x39   :  { %123 = vmatprep.subr.bf16.mxu0 %v1784_v1  ;;  %v1787_v3 = vld [vmem:[%s2224_s0] sm:$0xff]   ;;  %166 = vmatprep.subr.bf16.mxu1 %v1788_v4  ;;  %v1794_v8 = vld [vmem:[#allocation2 + $0x8] ss:$16 sps:$4 sm:$0xff]   ;;  %v1796_v9 = vld [vmem:[#allocation2 + $0xc] ss:$16 sps:$4 sm:$0xff]  }
  0x3a   :  { %124 = vmatpush1.bf16.msra.mxu0 %v1786_v2  ;;  %v1791_v6 = vld [vmem:[#allocation2] ss:$16 sps:$4 sm:$0xff]   ;;  %v1793_v7 = vld [vmem:[#allocation2 + $0x4] ss:$16 sps:$4 sm:$0xff]   ;;  %167 = vmatpush1.bf16.msra.mxu1 %v1790_v5  ;;  %v1802_v12 = vld [vmem:[#allocation2 + $0x2c] ss:$16 sps:$4 sm:$0xff]  }
  0x3b   :  { %1011 = vmatprep.subr.bf16.mxu0 %v1793_v7  ;;  %v1799_v10 = vld [vmem:[#allocation2 + $0x24] ss:$16 sps:$4 sm:$0xff]   ;;  %1097 = vmatprep.subr.bf16.mxu1 %v1796_v9  ;;  %v1797_v11 = vld [vmem:[#allocation2 + $0x20] ss:$16 sps:$4 sm:$0xff]   ;;  %v1800_v13 = vld [vmem:[#allocation2 + $0x28] ss:$16 sps:$4 sm:$0xff]  }
  0x3c   :  { %v1805_v14 = vld [vmem:[#allocation2 + $0x44] ss:$16 sps:$4 sm:$0xff]   ;;  %v1808_v15 = vld [vmem:[#allocation2 + $0x4c] ss:$16 sps:$4 sm:$0xff]   ;;  %v1803_v16 = vld [vmem:[#allocation2 + $0x40] ss:$16 sps:$4 sm:$0xff]  }
  0x3d   :  { %1553 = vmatmul.mubr.msk.bf16.vlgmr.msra.gmra.mrb[0].mxu0 %vm119_vm0, %v1787_v3  ;;  %1554 = vmatmul.mubr.msk.bf16.vlgmr.msra.gmra.mrb[0].mxu1 %vm119_vm0, %v1787_v3  ;;  %v1811_v17 = vld [vmem:[#allocation2 + $0x64] ss:$16 sps:$4 sm:$0xff]   ;;  %v1806_v18 = vld [vmem:[#allocation2 + $0x48] ss:$16 sps:$4 sm:$0xff]   ;;  %v1814_v19 = vld [vmem:[#allocation2 + $0x6c] ss:$16 sps:$4 sm:$0xff]  }
  0x3e   :  { %1012 = vmatpush1.bf16.msra.mxu0 %v1791_v6  ;;  %1098 = vmatpush1.bf16.msra.mxu1 %v1794_v8  ;;  %v1809_v20 = vld [vmem:[#allocation2 + $0x60] ss:$16 sps:$4 sm:$0xff]   ;;  %v1817_v21 = vld [vmem:[#allocation2 + $0x84] ss:$16 sps:$4 sm:$0xff]   ;;  %v1812_v22 = vld [vmem:[#allocation2 + $0x68] ss:$16 sps:$4 sm:$0xff]   ;;  %v74_v8 = vlaneseq }
  0x3f   :  { %1013 = vmatprep.subr.bf16.mxu0 %v1799_v10  ;;  %1099 = vmatprep.subr.bf16.mxu1 %v1802_v12  ;;  %v1820_v23 = vld [vmem:[#allocation2 + $0x8c] ss:$16 sps:$4 sm:$0xff]   ;;  %v1815_v24 = vld [vmem:[#allocation2 + $0x80] ss:$16 sps:$4 sm:$0xff]   ;;  %v1823_v25 = vld [vmem:[#allocation2 + $0xa4] ss:$16 sps:$4 sm:$0xff]  }
  0x40   :  { %v1818_v26 = vld [vmem:[#allocation2 + $0x88] ss:$16 sps:$4 sm:$0xff]   ;;  %v1826_v27 = vld [vmem:[#allocation2 + $0xac] ss:$16 sps:$4 sm:$0xff]   ;;  %v1821_v28 = vld [vmem:[#allocation2 + $0xa0] ss:$16 sps:$4 sm:$0xff]  }
  0x41   :  { %v1829_v29 = vld [vmem:[#allocation2 + $0xc4] ss:$16 sps:$4 sm:$0xff]   ;;  %v1824_v30 = vld [vmem:[#allocation2 + $0xa8] ss:$16 sps:$4 sm:$0xff]   ;;  %v1832_v31 = vld [vmem:[#allocation2 + $0xcc] ss:$16 sps:$4 sm:$0xff]  }
  0x42   :  { %1014 = vmatpush1.bf16.msra.mxu0 %v1797_v11  ;;  %1100 = vmatpush1.bf16.msra.mxu1 %v1800_v13  ;;  %v1827_v32 = vld [vmem:[#allocation2 + $0xc0] ss:$16 sps:$4 sm:$0xff]   ;;  %v1835_v33 = vld [vmem:[#allocation2 + $0xe4] ss:$16 sps:$4 sm:$0xff]   ;;  %v1830_v34 = vld [vmem:[#allocation2 + $0xc8] ss:$16 sps:$4 sm:$0xff]  }
  0x43   :  { %1015 = vmatprep.subr.bf16.mxu0 %v1805_v14  ;;  %1101 = vmatprep.subr.bf16.mxu1 %v1808_v15  ;;  %v1838_v35 = vld [vmem:[#allocation2 + $0xec] ss:$16 sps:$4 sm:$0xff]   ;;  %v1833_v36 = vld [vmem:[#allocation2 + $0xe0] ss:$16 sps:$4 sm:$0xff]   ;;  %v1841_v37 = vld [vmem:[#allocation2 + $0x104] ss:$16 sps:$4 sm:$0xff]  }
  0x44   :  { %v1836_v38 = vld [vmem:[#allocation2 + $0xe8] ss:$16 sps:$4 sm:$0xff]   ;;  %v1844_v39 = vld [vmem:[#allocation2 + $0x10c] ss:$16 sps:$4 sm:$0xff]   ;;  %v1839_v40 = vld [vmem:[#allocation2 + $0x100] ss:$16 sps:$4 sm:$0xff]  }
  0x45   :  { %v1847_v41 = vld [vmem:[#allocation2 + $0x124] ss:$16 sps:$4 sm:$0xff]   ;;  %v1842_v42 = vld [vmem:[#allocation2 + $0x108] ss:$16 sps:$4 sm:$0xff]   ;;  %v1845_v43 = vld [vmem:[#allocation2 + $0x120] ss:$16 sps:$4 sm:$0xff]  }
  0x46   :  { %1016 = vmatpush1.bf16.msra.mxu0 %v1803_v16  ;;  %1102 = vmatpush1.bf16.msra.mxu1 %v1806_v18  ;;  %v1850_v44 = vld [vmem:[#allocation2 + $0x12c] ss:$16 sps:$4 sm:$0xff]   ;;  %v1848_v45 = vld [vmem:[#allocation2 + $0x128] ss:$16 sps:$4 sm:$0xff]   ;;  %v1853_v46 = vld [vmem:[#allocation2 + $0x144] ss:$16 sps:$4 sm:$0xff]  }
  0x47   :  { %1017 = vmatprep.subr.bf16.mxu0 %v1811_v17  ;;  %1103 = vmatprep.subr.bf16.mxu1 %v1814_v19  ;;  %v1856_v47 = vld [vmem:[#allocation2 + $0x14c] ss:$16 sps:$4 sm:$0xff]   ;;  %v1851_v48 = vld [vmem:[#allocation2 + $0x140] ss:$16 sps:$4 sm:$0xff]   ;;  %v1859_v49 = vld [vmem:[#allocation2 + $0x164] ss:$16 sps:$4 sm:$0xff]  }
  0x48   :  { %v1854_v50 = vld [vmem:[#allocation2 + $0x148] ss:$16 sps:$4 sm:$0xff]   ;;  %v1862_v51 = vld [vmem:[#allocation2 + $0x16c] ss:$16 sps:$4 sm:$0xff]   ;;  %v1857_v52 = vld [vmem:[#allocation2 + $0x160] ss:$16 sps:$4 sm:$0xff]  }
  0x49   :  { %v1865_v53 = vld [vmem:[#allocation2 + $0x184] ss:$16 sps:$4 sm:$0xff]   ;;  %v1860_v54 = vld [vmem:[#allocation2 + $0x168] ss:$16 sps:$4 sm:$0xff]   ;;  %v1868_v55 = vld [vmem:[#allocation2 + $0x18c] ss:$16 sps:$4 sm:$0xff]  }
  0x4a   :  { %1018 = vmatpush1.bf16.msra.mxu0 %v1809_v20  ;;  %1104 = vmatpush1.bf16.msra.mxu1 %v1812_v22  ;;  %v1863_v56 = vld [vmem:[#allocation2 + $0x180] ss:$16 sps:$4 sm:$0xff]   ;;  %v1871_v57 = vld [vmem:[#allocation2 + $0x1a4] ss:$16 sps:$4 sm:$0xff]   ;;  %v1866_v58 = vld [vmem:[#allocation2 + $0x188] ss:$16 sps:$4 sm:$0xff]  }
  0x4b   :  { %1019 = vmatprep.subr.bf16.mxu0 %v1817_v21  ;;  %1105 = vmatprep.subr.bf16.mxu1 %v1820_v23  ;;  %v1874_v59 = vld [vmem:[#allocation2 + $0x1ac] ss:$16 sps:$4 sm:$0xff]   ;;  %v1869_v60 = vld [vmem:[#allocation2 + $0x1a0] ss:$16 sps:$4 sm:$0xff]   ;;  %v1872_v61 = vld [vmem:[#allocation2 + $0x1a8] ss:$16 sps:$4 sm:$0xff]  }
  0x4c   :  { %v1877_v62 = vld [vmem:[#allocation2 + $0x1c4] ss:$16 sps:$4 sm:$0xff]   ;;  %v1880_v63 = vld [vmem:[#allocation2 + $0x1cc] ss:$16 sps:$4 sm:$0xff]   ;;  %v1875_v0 = vld [vmem:[#allocation2 + $0x1c0] ss:$16 sps:$4 sm:$0xff]  }
  0x4d   :  { %v1878_v1 = vld [vmem:[#allocation2 + $0x1c8] ss:$16 sps:$4 sm:$0xff]   ;;  %v1883_v2 = vld [vmem:[#allocation2 + $0x1e4] ss:$16 sps:$4 sm:$0xff]   ;;  %v1886_v3 = vld [vmem:[#allocation2 + $0x1ec] ss:$16 sps:$4 sm:$0xff]  }
  0x4e   :  { %1020 = vmatpush1.bf16.msra.mxu0 %v1815_v24  ;;  %1106 = vmatpush1.bf16.msra.mxu1 %v1818_v26  ;;  %v1881_v4 = vld [vmem:[#allocation2 + $0x1e0] ss:$16 sps:$4 sm:$0xff]   ;;  %v1884_v5 = vld [vmem:[#allocation2 + $0x1e8] ss:$16 sps:$4 sm:$0xff]   ;;  %v1889_v6 = vld [vmem:[#allocation2 + $0x204] ss:$16 sps:$4 sm:$0xff]  }
  0x4f   :  { %1021 = vmatprep.subr.bf16.mxu0 %v1823_v25  ;;  %1107 = vmatprep.subr.bf16.mxu1 %v1826_v27  ;;  %v1892_v7 = vld [vmem:[#allocation2 + $0x20c] ss:$16 sps:$4 sm:$0xff]   ;;  %v2186_v9 = vshrl.u32 %v74_v8, 7  ;;  %v72_v11 = vld [vmem:[%s2226_s2] sm:$0xf] }
  0x50   :  { %v1926_v8 = vld [vmem:[#allocation2 + $0x2c8] ss:$16 sps:$4 sm:$0xff]  }
  0x51   :  { %v76_v10 = vsub.s32 0, %v2186_v9  ;;  %v80_v12 = vsub.s32 1, %v2186_v9  ;;  %v84_v13 = vsub.s32 2, %v2186_v9  ;;  %v88_v15 = vsub.s32 3, %v2186_v9 }
  0x52   :  { %1022 = vmatpush1.bf16.msra.mxu0 %v1821_v28  ;;  %1108 = vmatpush1.bf16.msra.mxu1 %v1824_v30 }
  0x53   :  { %1023 = vmatprep.subr.bf16.mxu0 %v1829_v29  ;;  %1109 = vmatprep.subr.bf16.mxu1 %v1832_v31  ;;  %v77_v14 = vrot.slane %v72_v11, %v76_v10  ;;  %v81_v16 = vrot.slane %v72_v11, %v80_v12  ;;  %v85_v18 = vrot.slane %v72_v11, %v84_v13 }
  0x54   :  { %v89_v21 = vrot.slane %v72_v11, %v88_v15  ;;  %v1931_v11 = vld [vmem:[#allocation2 + $0x2e4] ss:$16 sps:$4 sm:$0xff]  }
  0x56   :  { %1024 = vmatpush1.bf16.msra.mxu0 %v1827_v32  ;;  %1110 = vmatpush1.bf16.msra.mxu1 %v1830_v34 }
  0x57   :  { %1025 = vmatprep.subr.bf16.mxu0 %v1835_v33  ;;  %1111 = vmatprep.subr.bf16.mxu1 %v1838_v35 }
  0x5a   :  { %1026 = vmatpush1.bf16.msra.mxu0 %v1833_v36  ;;  %1112 = vmatpush1.bf16.msra.mxu1 %v1836_v38 }
  0x5b   :  { %1027 = vmatprep.subr.bf16.mxu0 %v1841_v37  ;;  %1113 = vmatprep.subr.bf16.mxu1 %v1844_v39 }
  0x5e   :  { %1028 = vmatpush1.bf16.msra.mxu0 %v1839_v40  ;;  %1114 = vmatpush1.bf16.msra.mxu1 %v1842_v42 }
  0x5f   :  { %1029 = vmatprep.subr.bf16.mxu0 %v1847_v41  ;;  %1115 = vmatprep.subr.bf16.mxu1 %v1850_v44  ;;  %v1890_v44 = vld [vmem:[#allocation2 + $0x208] ss:$16 sps:$4 sm:$0xff]  }
  0x62   :  { %1030 = vmatpush1.bf16.msra.mxu0 %v1845_v43  ;;  %1116 = vmatpush1.bf16.msra.mxu1 %v1848_v45  ;;  %v1887_v43 = vld [vmem:[#allocation2 + $0x200] ss:$16 sps:$4 sm:$0xff]  }
  0x63   :  { %1031 = vmatprep.subr.bf16.mxu0 %v1853_v46  ;;  %1117 = vmatprep.subr.bf16.mxu1 %v1856_v47  ;;  %v1895_v46 = vld [vmem:[#allocation2 + $0x224] ss:$16 sps:$4 sm:$0xff]   ;;  %v1898_v47 = vld [vmem:[#allocation2 + $0x22c] ss:$16 sps:$4 sm:$0xff]  }
  0x66   :  { %1032 = vmatpush1.bf16.msra.mxu0 %v1851_v48  ;;  %1118 = vmatpush1.bf16.msra.mxu1 %v1854_v50 }
  0x67   :  { %1033 = vmatprep.subr.bf16.mxu0 %v1859_v49  ;;  %1119 = vmatprep.subr.bf16.mxu1 %v1862_v51  ;;  %v1893_v51 = vld [vmem:[#allocation2 + $0x220] ss:$16 sps:$4 sm:$0xff]  }
  0x6a   :  { %1034 = vmatpush1.bf16.msra.mxu0 %v1857_v52  ;;  %1120 = vmatpush1.bf16.msra.mxu1 %v1860_v54  ;;  %v1896_v52 = vld [vmem:[#allocation2 + $0x228] ss:$16 sps:$4 sm:$0xff]   ;;  %v1904_v54 = vld [vmem:[#allocation2 + $0x24c] ss:$16 sps:$4 sm:$0xff]  }
  0x6b   :  { %1035 = vmatprep.subr.bf16.mxu0 %v1865_v53  ;;  %1121 = vmatprep.subr.bf16.mxu1 %v1868_v55  ;;  %v1901_v53 = vld [vmem:[#allocation2 + $0x244] ss:$16 sps:$4 sm:$0xff]   ;;  %v1899_v55 = vld [vmem:[#allocation2 + $0x240] ss:$16 sps:$4 sm:$0xff]  }
  0x6e   :  { %1036 = vmatpush1.bf16.msra.mxu0 %v1863_v56  ;;  %1122 = vmatpush1.bf16.msra.mxu1 %v1866_v58  ;;  %v1902_v56 = vld [vmem:[#allocation2 + $0x248] ss:$16 sps:$4 sm:$0xff]   ;;  %v1910_v58 = vld [vmem:[#allocation2 + $0x26c] ss:$16 sps:$4 sm:$0xff]  }
  0x6f   :  { %1037 = vmatprep.subr.bf16.mxu0 %v1871_v57  ;;  %1123 = vmatprep.subr.bf16.mxu1 %v1874_v59  ;;  %v1907_v57 = vld [vmem:[#allocation2 + $0x264] ss:$16 sps:$4 sm:$0xff]   ;;  %v1905_v59 = vld [vmem:[#allocation2 + $0x260] ss:$16 sps:$4 sm:$0xff]  }
  0x72   :  { %1038 = vmatpush1.bf16.msra.mxu0 %v1869_v60  ;;  %1124 = vmatpush1.bf16.msra.mxu1 %v1872_v61  ;;  %v1908_v60 = vld [vmem:[#allocation2 + $0x268] ss:$16 sps:$4 sm:$0xff]   ;;  %v1913_v61 = vld [vmem:[#allocation2 + $0x284] ss:$16 sps:$4 sm:$0xff]  }
  0x73   :  { %1039 = vmatprep.subr.bf16.mxu0 %v1877_v62  ;;  %1125 = vmatprep.subr.bf16.mxu1 %v1880_v63  ;;  %v1916_v62 = vld [vmem:[#allocation2 + $0x28c] ss:$16 sps:$4 sm:$0xff]   ;;  %v1911_v63 = vld [vmem:[#allocation2 + $0x280] ss:$16 sps:$4 sm:$0xff]  }
  0x76   :  { %1040 = vmatpush1.bf16.msra.mxu0 %v1875_v0  ;;  %1126 = vmatpush1.bf16.msra.mxu1 %v1878_v1  ;;  %v1914_v0 = vld [vmem:[#allocation2 + $0x288] ss:$16 sps:$4 sm:$0xff]   ;;  %v1919_v1 = vld [vmem:[#allocation2 + $0x2a4] ss:$16 sps:$4 sm:$0xff]  }
  0x77   :  { %1041 = vmatprep.subr.bf16.mxu0 %v1883_v2  ;;  %1127 = vmatprep.subr.bf16.mxu1 %v1886_v3  ;;  %v1922_v2 = vld [vmem:[#allocation2 + $0x2ac] ss:$16 sps:$4 sm:$0xff]   ;;  %v1917_v3 = vld [vmem:[#allocation2 + $0x2a0] ss:$16 sps:$4 sm:$0xff]  }
  0x7a   :  { %1042 = vmatpush1.bf16.msra.mxu0 %v1881_v4  ;;  %1128 = vmatpush1.bf16.msra.mxu1 %v1884_v5  ;;  %v1920_v4 = vld [vmem:[#allocation2 + $0x2a8] ss:$16 sps:$4 sm:$0xff]   ;;  %v1925_v5 = vld [vmem:[#allocation2 + $0x2c4] ss:$16 sps:$4 sm:$0xff]  }
  0x7b   :  { %1054 = vmatprep.subr.bf16.mxu0 %v1889_v6  ;;  %1140 = vmatprep.subr.bf16.mxu1 %v1892_v7  ;;  %v1928_v6 = vld [vmem:[#allocation2 + $0x2cc] ss:$16 sps:$4 sm:$0xff]   ;;  %v1923_v7 = vld [vmem:[#allocation2 + $0x2c0] ss:$16 sps:$4 sm:$0xff]  }
 0x110   :  { %v157_v17 = vpop.f32.mrb[0].mxu0  ;;  %v200_v26 = vpop.f32.mrb[0].mxu1 }
 0x111   :  { %v158_v19 = vadd.f32 %v157_v17, %v77_v14  ;;  %v159_v20 = vpop.f32.mrb[1].mxu0  ;;  %v201_v28 = vadd.f32 %v200_v26, %v85_v18  ;;  %v202_v29 = vpop.f32.mrb[1].mxu1  ;;  %v1932_v17 = vld [vmem:[#allocation2 + $0x2e8] ss:$16 sps:$4 sm:$0xff]   ;;  %v1949_v26 = vld [vmem:[#allocation2 + $0x344] ss:$16 sps:$4 sm:$0xff]  }
 0x112   :  { %v160_v22 = vadd.f32 %v159_v20, %v81_v16  ;;  %v161_v23 = vpop.f32.mrb[2].mxu0  ;;  %v203_v32 = vadd.f32 %v202_v29, %v89_v21  ;;  %v204_v33 = vpop.f32.mrb[2].mxu1  ;;  %v1935_v20 = vld [vmem:[#allocation2 + $0x300] ss:$16 sps:$4 sm:$0xff]   ;;  %v1950_v29 = vld [vmem:[#allocation2 + $0x348] ss:$16 sps:$4 sm:$0xff]  }
 0x113   :  { %v162_v24 = vadd.f32 %v161_v23, %v77_v14  ;;  %v163_v25 = vpop.f32.mrb[3].mxu0  ;;  %v209_v30 = vmax.f32 %v158_v19, 0.0  ;;  %v211_v36 = vmax.f32 %v201_v28, 0.0  ;;  %v205_v37 = vadd.f32 %v204_v33, %v85_v18  ;;  %v206_v38 = vpop.f32.mrb[3].mxu1  ;;  %v1934_v14 = vld [vmem:[#allocation2 + $0x2ec] ss:$16 sps:$4 sm:$0xff]  }
 0x114   :  { %v164_v27 = vadd.f32 %v163_v25, %v81_v16  ;;  %v210_v34 = vmax.f32 %v160_v22, 0.0  ;;  %v212_v40 = vmax.f32 %v203_v32, 0.0  ;;  %v207_v41 = vadd.f32 %v206_v38, %v89_v21  ;;  %v1929_v16 = vld [vmem:[#allocation2 + $0x2e0] ss:$16 sps:$4 sm:$0xff]   ;;  %v1937_v18 = vld [vmem:[#allocation2 + $0x304] ss:$16 sps:$4 sm:$0xff]  }
 0x115   :  { %v213_v31 = vmax.f32 %v162_v24, 0.0  ;;  %v215_v45 = vmax.f32 %v205_v37, 0.0  ;;  %v1940_v19 = vld [vmem:[#allocation2 + $0x30c] ss:$16 sps:$4 sm:$0xff]   ;;  %v1938_v21 = vld [vmem:[#allocation2 + $0x308] ss:$16 sps:$4 sm:$0xff]  }
 0x116   :  { %v214_v35 = vmax.f32 %v164_v27, 0.0  ;;  %v216_v48 = vmax.f32 %v207_v41, 0.0  ;;  %v1943_v22 = vld [vmem:[#allocation2 + $0x324] ss:$16 sps:$4 sm:$0xff]   ;;  %v1946_v23 = vld [vmem:[#allocation2 + $0x32c] ss:$16 sps:$4 sm:$0xff]  }
 0x117   :  { %v217_v39 = vpack.c.bf16 %v213_v31, %v209_v30  ;;  %v2203_v49 = vpack.c.bf16 %v215_v45, %v211_v36  ;;  %v1941_v24 = vld [vmem:[#allocation2 + $0x320] ss:$16 sps:$4 sm:$0xff]   ;;  %v1944_v25 = vld [vmem:[#allocation2 + $0x328] ss:$16 sps:$4 sm:$0xff]   ;;  %v1952_v27 = vld [vmem:[#allocation2 + $0x34c] ss:$16 sps:$4 sm:$0xff]  }
 0x118   :  { %v218_v42 = vpack.c.bf16 %v214_v35, %v210_v34  ;;  %v220_v50 = vpack.c.bf16 %v216_v48, %v212_v40  ;;  %v1947_v28 = vld [vmem:[#allocation2 + $0x340] ss:$16 sps:$4 sm:$0xff]   ;;  %v1955_v30 = vld [vmem:[#allocation2 + $0x364] ss:$16 sps:$4 sm:$0xff]   ;;  %v1958_v31 = vld [vmem:[#allocation2 + $0x36c] ss:$16 sps:$4 sm:$0xff]  }
 0x119   :  { %v1953_v32 = vld [vmem:[#allocation2 + $0x360] ss:$16 sps:$4 sm:$0xff]   ;;  %v1956_v33 = vld [vmem:[#allocation2 + $0x368] ss:$16 sps:$4 sm:$0xff]   ;;  %v1961_v34 = vld [vmem:[#allocation2 + $0x384] ss:$16 sps:$4 sm:$0xff]  }
 0x11a   :  { %1043 = vmatprep.mubr.bf16.mxu0 %v218_v42  ;;  %1129 = vmatprep.mubr.bf16.mxu1 %v218_v42  ;;  %v1964_v35 = vld [vmem:[#allocation2 + $0x38c] ss:$16 sps:$4 sm:$0xff]   ;;  %v1959_v36 = vld [vmem:[#allocation2 + $0x380] ss:$16 sps:$4 sm:$0xff]   ;;  %v1962_v37 = vld [vmem:[#allocation2 + $0x388] ss:$16 sps:$4 sm:$0xff]  }
 0x11b   :  { %1044 = vmatmul.mubr.bf16.vlgmr.msra.gmra.mrb[4].mxu0 %v217_v39  ;;  %1130 = vmatmul.mubr.bf16.vlgmr.msra.gmra.mrb[4].mxu1 %v217_v39  ;;  %v1967_v38 = vld [vmem:[#allocation2 + $0x3a4] ss:$16 sps:$4 sm:$0xff]   ;;  %v1970_v39 = vld [vmem:[#allocation2 + $0x3ac] ss:$16 sps:$4 sm:$0xff]   ;;  %v1965_v40 = vld [vmem:[#allocation2 + $0x3a0] ss:$16 sps:$4 sm:$0xff]  }
 0x11c   :  { %1055 = vmatpush1.bf16.msra.mxu0 %v1887_v43  ;;  %1141 = vmatpush1.bf16.msra.mxu1 %v1890_v44  ;;  %v1968_v41 = vld [vmem:[#allocation2 + $0x3a8] ss:$16 sps:$4 sm:$0xff]   ;;  %v1973_v42 = vld [vmem:[#allocation2 + $0x3c4] ss:$16 sps:$4 sm:$0xff]   ;;  %v1976_v43 = vld [vmem:[#allocation2 + $0x3cc] ss:$16 sps:$4 sm:$0xff]  }
 0x11d   :  { %1056 = vmatprep.subr.bf16.mxu0 %v1895_v46  ;;  %1142 = vmatprep.subr.bf16.mxu1 %v1898_v47  ;;  %v1971_v44 = vld [vmem:[#allocation2 + $0x3c0] ss:$16 sps:$4 sm:$0xff]   ;;  %v1974_v45 = vld [vmem:[#allocation2 + $0x3c8] ss:$16 sps:$4 sm:$0xff]   ;;  %v1979_v46 = vld [vmem:[#allocation2 + $0x3e4] ss:$16 sps:$4 sm:$0xff]  }
 0x11e   :  { %1086 = vmatprep.mubr.bf16.mxu0 %v220_v50  ;;  %1172 = vmatprep.mubr.bf16.mxu1 %v220_v50  ;;  %v1982_v47 = vld [vmem:[#allocation2 + $0x3ec] ss:$16 sps:$4 sm:$0xff]   ;;  %v1977_v48 = vld [vmem:[#allocation2 + $0x3e0] ss:$16 sps:$4 sm:$0xff]   ;;  %v1980_v50 = vld [vmem:[#allocation2 + $0x3e8] ss:$16 sps:$4 sm:$0xff]  }
 0x120   :  { %1057 = vmatpush1.bf16.msra.mxu0 %v1893_v51  ;;  %1143 = vmatpush1.bf16.msra.mxu1 %v1896_v52  ;;  %v1983_v51 = vld [vmem:[#allocation4 + $0x40] sm:$0xff]  }
 0x121   :  { %1058 = vmatprep.subr.bf16.mxu0 %v1901_v53  ;;  %1144 = vmatprep.subr.bf16.mxu1 %v1904_v54  ;;  %v1984_v52 = vld [vmem:[#allocation4 + $0xc0] sm:$0xff]  }
 0x122   :  { %v1985_v53 = vld [vmem:[#allocation4] sm:$0xff]  }
 0x123   :  { %v1986_v54 = vld [vmem:[#allocation4 + $0x80] sm:$0xff]  }
 0x124   :  { %1059 = vmatpush1.bf16.msra.mxu0 %v1899_v55  ;;  %1145 = vmatpush1.bf16.msra.mxu1 %v1902_v56  ;;  %v1987_v55 = vld [vmem:[#allocation4 + $0x48] sm:$0xff]  }
 0x125   :  { %1060 = vmatprep.subr.bf16.mxu0 %v1907_v57  ;;  %1146 = vmatprep.subr.bf16.mxu1 %v1910_v58  ;;  %v1988_v56 = vld [vmem:[#allocation4 + $0xc8] sm:$0xff]  }
 0x126   :  { %v1989_v57 = vld [vmem:[#allocation4 + $0x8] sm:$0xff]  }
 0x127   :  { %v1990_v58 = vld [vmem:[#allocation4 + $0x88] sm:$0xff]  }
 0x128   :  { %1061 = vmatpush1.bf16.msra.mxu0 %v1905_v59  ;;  %1147 = vmatpush1.bf16.msra.mxu1 %v1908_v60  ;;  %v1991_v59 = vld [vmem:[#allocation4 + $0x50] sm:$0xff]  }
 0x129   :  { %1062 = vmatprep.subr.bf16.mxu0 %v1913_v61  ;;  %1148 = vmatprep.subr.bf16.mxu1 %v1916_v62  ;;  %v1992_v60 = vld [vmem:[#allocation4 + $0xd0] sm:$0xff]  }
 0x12a   :  { %v1993_v61 = vld [vmem:[#allocation4 + $0x10] sm:$0xff]  }
 0x12b   :  { %v1994_v62 = vld [vmem:[#allocation4 + $0x90] sm:$0xff]  }
 0x12c   :  { %1063 = vmatpush1.bf16.msra.mxu0 %v1911_v63  ;;  %1149 = vmatpush1.bf16.msra.mxu1 %v1914_v0  ;;  %v1995_v63 = vld [vmem:[#allocation4 + $0x58] sm:$0xff]  }
 0x12d   :  { %1064 = vmatprep.subr.bf16.mxu0 %v1919_v1  ;;  %1150 = vmatprep.subr.bf16.mxu1 %v1922_v2  ;;  %v1996_v0 = vld [vmem:[#allocation4 + $0xd8] sm:$0xff]   ;;  %v1999_v2 = vld [vmem:[#allocation4 + $0x60] sm:$0xff]  }
 0x12e   :  { %v1997_v1 = vld [vmem:[#allocation4 + $0x18] sm:$0xff]  }
 0x130   :  { %1065 = vmatpush1.bf16.msra.mxu0 %v1917_v3  ;;  %1151 = vmatpush1.bf16.msra.mxu1 %v1920_v4  ;;  %v2000_v3 = vld [vmem:[#allocation4 + $0xe0] sm:$0xff]  }
 0x131   :  { %1066 = vmatprep.subr.bf16.mxu0 %v1925_v5  ;;  %1152 = vmatprep.subr.bf16.mxu1 %v1928_v6  ;;  %v2001_v4 = vld [vmem:[#allocation4 + $0x20] sm:$0xff]   ;;  %v2003_v6 = vld [vmem:[#allocation4 + $0x68] sm:$0xff]  }
 0x132   :  { %v2002_v5 = vld [vmem:[#allocation4 + $0xa0] sm:$0xff]  }
 0x134   :  { %1067 = vmatpush1.bf16.msra.mxu0 %v1923_v7  ;;  %1153 = vmatpush1.bf16.msra.mxu1 %v1926_v8  ;;  %v2004_v7 = vld [vmem:[#allocation4 + $0xe8] sm:$0xff]  }
 0x135   :  { %1068 = vmatprep.subr.bf16.mxu0 %v1931_v11  ;;  %1154 = vmatprep.subr.bf16.mxu1 %v1934_v14  ;;  %v2005_v8 = vld [vmem:[#allocation4 + $0x28] sm:$0xff]   ;;  %v2007_v14 = vld [vmem:[#allocation4 + $0x70] sm:$0xff]  }
 0x136   :  { %v2006_v11 = vld [vmem:[#allocation4 + $0xa8] sm:$0xff]  }
 0x138   :  { %1069 = vmatpush1.bf16.msra.mxu0 %v1929_v16  ;;  %1155 = vmatpush1.bf16.msra.mxu1 %v1932_v17  ;;  %v2008_v16 = vld [vmem:[#allocation4 + $0xf0] sm:$0xff]  }
 0x139   :  { %1070 = vmatprep.subr.bf16.mxu0 %v1937_v18  ;;  %1156 = vmatprep.subr.bf16.mxu1 %v1940_v19  ;;  %v2009_v17 = vld [vmem:[#allocation4 + $0x30] sm:$0xff]   ;;  %v2011_v19 = vld [vmem:[#allocation4 + $0x78] sm:$0xff]  }
 0x13a   :  { %v2010_v18 = vld [vmem:[#allocation4 + $0xb0] sm:$0xff]  }
 0x13c   :  { %1071 = vmatpush1.bf16.msra.mxu0 %v1935_v20  ;;  %1157 = vmatpush1.bf16.msra.mxu1 %v1938_v21  ;;  %v2012_v20 = vld [vmem:[#allocation4 + $0xf8] sm:$0xff]  }
 0x13d   :  { %1072 = vmatprep.subr.bf16.mxu0 %v1943_v22  ;;  %1158 = vmatprep.subr.bf16.mxu1 %v1946_v23  ;;  %v2013_v21 = vld [vmem:[#allocation4 + $0x38] sm:$0xff]   ;;  %v349_v23 = vld [vmem:[%s2228_s4] sm:$0xf] }
 0x13e   :  { %v2014_v22 = vld [vmem:[#allocation4 + $0xb8] sm:$0xff]  }
 0x140   :  { %1073 = vmatpush1.bf16.msra.mxu0 %v1941_v24  ;;  %1159 = vmatpush1.bf16.msra.mxu1 %v1944_v25  ;;  %v354_v24 = vrot.slane %v349_v23, %v76_v10  ;;  %v362_v25 = vrot.slane %v349_v23, %v84_v13 }
 0x141   :  { %1074 = vmatprep.subr.bf16.mxu0 %v1949_v26  ;;  %1160 = vmatprep.subr.bf16.mxu1 %v1952_v27  ;;  %v358_v26 = vrot.slane %v349_v23, %v80_v12  ;;  %v366_v27 = vrot.slane %v349_v23, %v88_v15 }
 0x144   :  { %1075 = vmatpush1.bf16.msra.mxu0 %v1947_v28  ;;  %1161 = vmatpush1.bf16.msra.mxu1 %v1950_v29 }
 0x145   :  { %1076 = vmatprep.subr.bf16.mxu0 %v1955_v30  ;;  %1162 = vmatprep.subr.bf16.mxu1 %v1958_v31 }
 0x148   :  { %1077 = vmatpush1.bf16.msra.mxu0 %v1953_v32  ;;  %1163 = vmatpush1.bf16.msra.mxu1 %v1956_v33 }
 0x149   :  { %1078 = vmatprep.subr.bf16.mxu0 %v1961_v34  ;;  %1164 = vmatprep.subr.bf16.mxu1 %v1964_v35 }
 0x14c   :  { %1079 = vmatpush1.bf16.msra.mxu0 %v1959_v36  ;;  %1165 = vmatpush1.bf16.msra.mxu1 %v1962_v37 }
 0x14d   :  { %1080 = vmatprep.subr.bf16.mxu0 %v1967_v38  ;;  %1166 = vmatprep.subr.bf16.mxu1 %v1970_v39 }
 0x150   :  { %1081 = vmatpush1.bf16.msra.mxu0 %v1965_v40  ;;  %1167 = vmatpush1.bf16.msra.mxu1 %v1968_v41 }
 0x151   :  { %1082 = vmatprep.subr.bf16.mxu0 %v1973_v42  ;;  %1168 = vmatprep.subr.bf16.mxu1 %v1976_v43 }
 0x154   :  { %1083 = vmatpush1.bf16.msra.mxu0 %v1971_v44  ;;  %1169 = vmatpush1.bf16.msra.mxu1 %v1974_v45 }
 0x155   :  { %1084 = vmatprep.subr.bf16.mxu0 %v1979_v46  ;;  %1170 = vmatprep.subr.bf16.mxu1 %v1982_v47 }
 0x158   :  { %1085 = vmatpush1.bf16.msra.mxu0 %v1977_v48  ;;  %1171 = vmatpush1.bf16.msra.mxu1 %v1980_v50 }
 0x159   :  { %1716 = vmatprep.subr.bf16.mxu0 %v1983_v51  ;;  %1738 = vmatprep.subr.bf16.mxu1 %v1984_v52 }
 0x15b   :  { %1087 = vmatmul.mubr.bf16.vlgmr.msra.gmra.mrb[4].mxu0 %v2203_v49  ;;  %1173 = vmatmul.mubr.bf16.vlgmr.msra.gmra.mrb[4].mxu1 %v2203_v49  ;;  %v1998_v49 = vld [vmem:[#allocation4 + $0x98] sm:$0xff]  }
 0x15c   :  { %1717 = vmatpush3.bf16.msra.mxu0 %v1985_v53  ;;  %1739 = vmatpush3.bf16.msra.mxu1 %v1986_v54  ;;  %v1683_v54 = vld [vmem:[#allocation6] ss:$0 sm:$0xff] }
 0x15d   :  { %1718 = vmatprep.subr.bf16.mxu0 %v1987_v55  ;;  %1740 = vmatprep.subr.bf16.mxu1 %v1988_v56 }
 0x160   :  { %1719 = vmatpush3.bf16.msra.mxu0 %v1989_v57  ;;  %1741 = vmatpush3.bf16.msra.mxu1 %v1990_v58 }
 0x161   :  { %1720 = vmatprep.subr.bf16.mxu0 %v1991_v59  ;;  %1742 = vmatprep.subr.bf16.mxu1 %v1992_v60 }
 0x164   :  { %1721 = vmatpush3.bf16.msra.mxu0 %v1993_v61  ;;  %1743 = vmatpush3.bf16.msra.mxu1 %v1994_v62 }
 0x165   :  { %1722 = vmatprep.subr.bf16.mxu0 %v1995_v63  ;;  %1744 = vmatprep.subr.bf16.mxu1 %v1996_v0 }
 0x168   :  { %1723 = vmatpush3.bf16.msra.mxu0 %v1997_v1  ;;  %1745 = vmatpush3.bf16.msra.mxu1 %v1998_v49 }
 0x169   :  { %1724 = vmatprep.subr.bf16.mxu0 %v1999_v2  ;;  %1746 = vmatprep.subr.bf16.mxu1 %v2000_v3 }
 0x16c   :  { %1725 = vmatpush3.bf16.msra.mxu0 %v2001_v4  ;;  %1747 = vmatpush3.bf16.msra.mxu1 %v2002_v5 }
 0x16d   :  { %1726 = vmatprep.subr.bf16.mxu0 %v2003_v6  ;;  %1748 = vmatprep.subr.bf16.mxu1 %v2004_v7 }
 0x170   :  { %1727 = vmatpush3.bf16.msra.mxu0 %v2005_v8  ;;  %1749 = vmatpush3.bf16.msra.mxu1 %v2006_v11 }
 0x171   :  { %1728 = vmatprep.subr.bf16.mxu0 %v2007_v14  ;;  %1750 = vmatprep.subr.bf16.mxu1 %v2008_v16 }
 0x174   :  { %1729 = vmatpush3.bf16.msra.mxu0 %v2009_v17  ;;  %1751 = vmatpush3.bf16.msra.mxu1 %v2010_v18 }
 0x175   :  { %1730 = vmatprep.subr.bf16.mxu0 %v2011_v19  ;;  %1752 = vmatprep.subr.bf16.mxu1 %v2012_v20 }
 0x178   :  { %1731 = vmatpush3.bf16.msra.mxu0 %v2013_v21  ;;  %1753 = vmatpush3.bf16.msra.mxu1 %v2014_v22 }
 0x22e   :  { %v1088_v28 = vpop.f32.mrb[4].mxu0  ;;  %v1174_v29 = vpop.f32.mrb[4].mxu1 }
 0x22f   :  { %v1760_v30 = vadd.f32 %v1088_v28, %v354_v24  ;;  %v1764_v31 = vadd.f32 %v1174_v29, %v362_v25  ;;  %v1090_v32 = vpop.f32.mrb[5].mxu0  ;;  %v1176_v33 = vpop.f32.mrb[5].mxu1 }
 0x230   :  { %v1761_v34 = vadd.f32 %v1090_v32, %v358_v26  ;;  %v1765_v35 = vadd.f32 %v1176_v33, %v366_v27  ;;  %v1092_v36 = vpop.f32.mrb[6].mxu0  ;;  %v1178_v37 = vpop.f32.mrb[6].mxu1 }
 0x231   :  { %v1762_v10 = vadd.f32 %v1092_v36, %v354_v24  ;;  %v1766_v38 = vadd.f32 %v1178_v37, %v362_v25  ;;  %v1094_v39 = vpop.f32.mrb[7].mxu0  ;;  %v1180_v13 = vpop.f32.mrb[7].mxu1  ;;  %v1183_v12 = vmax.f32 %v1760_v30, 0.0  ;;  %v1185_v42 = vmax.f32 %v1764_v31, 0.0 }
 0x232   :  { %v1763_v40 = vadd.f32 %v1094_v39, %v358_v26  ;;  %v1767_v41 = vadd.f32 %v1180_v13, %v366_v27  ;;  %v1184_v43 = vmax.f32 %v1761_v34, 0.0  ;;  %v1186_v44 = vmax.f32 %v1765_v35, 0.0 }
 0x233   :  { %v1187_v9 = vmax.f32 %v1762_v10, 0.0  ;;  %v1189_v15 = vmax.f32 %v1766_v38, 0.0 }
 0x234   :  { %v1188_v45 = vmax.f32 %v1763_v40, 0.0  ;;  %v1190_v46 = vmax.f32 %v1767_v41, 0.0 }
 0x235   :  { %v1191_v47 = vpack.c.bf16 %v1187_v9, %v1183_v12  ;;  %v1193_v48 = vpack.c.bf16 %v1189_v15, %v1185_v42 }
 0x236   :  { %v1192_v50 = vpack.c.bf16 %v1188_v45, %v1184_v43  ;;  %v1194_v51 = vpack.c.bf16 %v1190_v46, %v1186_v44 }
 0x238   :  { %1490 = vmatprep.mubr.bf16.mxu0 %v1192_v50  ;;  %1531 = vmatprep.mubr.bf16.mxu1 %v1194_v51 }
 0x239   :  { %1491 = vmatmul.mubr.bf16.vlgmr.msra.gmra.mrb[8].mxu0 %v1191_v47  ;;  %1532 = vmatmul.mubr.bf16.vlgmr.msra.gmra.mrb[8].mxu1 %v1193_v48 }
 0x30c   :  { %v1732_v52 = vpop.f32.mrb[8].mxu0  ;;  %v1754_v53 = vpop.f32.mrb[8].mxu1 }
 0x30d   :  { %v1733_v55 = vpop.f32.mrb[9].mxu0  ;;  %v1755_v56 = vpop.f32.mrb[9].mxu1 }
 0x30e   :  { %v1734_v57 = vadd.f32 %v1733_v55, %v1732_v52  ;;  %v1756_v58 = vadd.f32 %v1755_v56, %v1754_v53  ;;  %v1735_v59 = vpop.f32.mrb[10].mxu0  ;;  %v1757_v60 = vpop.f32.mrb[10].mxu1 }
 0x30f   :  { %v1736_v61 = vpop.f32.mrb[11].mxu0  ;;  %v1758_v62 = vpop.f32.mrb[11].mxu1 }
 0x310   :  { %v1493_v63 = vadd.f32 %v1734_v57, %v1683_v54  ;;  %v1737_v0 = vadd.f32 %v1736_v61, %v1735_v59  ;;  %v1759_v1 = vadd.f32 %v1758_v62, %v1757_v60 }
 0x312   :  { %v1534_v49 = vadd.f32 %v1756_v58, %v1493_v63  ;;  %v1496_v2 = vadd.f32 %v1737_v0, %v1683_v54 }
 0x314   :  { %1540 = vst [vmem:[%s2231_s7] sm:$0xff] %v1534_v49  ;;  %v1537_v3 = vadd.f32 %v1759_v1, %v1496_v2 }
 0x316   :  { %1541 = vst [vmem:[%s2231_s7 + $0x8] sm:$0xff] %v1537_v3 }
 0x317   :  { %1546 = vsyncpa [#allocation3], 1 }
 0x318   :  { %1547 = vsyncpa [#allocation5], 1 }

</bundles_post_ra>
